<compile_context>
chip_gen: v7x
topology: tpu7x:2x2x1
jax: 0.10.0
libtpu: 0.0.40
codegen_flags: <defaults>
</compile_context>

<pallas_src>
import functools

import jax
import jax.numpy as jnp
from jax.experimental import pallas as pl
from jax.experimental.pallas import tpu as pltpu


def _round_up(x, m):
    return (x + m - 1) // m * m


def _choose_tile(size, max_tile, pad_to, max_waste=0.125):
    """Pick (padded_size, tile) for one axis.

    padded_size is a multiple of `pad_to`; `tile` always divides padded_size.
    If the axis fits in one tile, the tile is the (minimally) padded axis
    itself (zero waste). Otherwise the largest tile (multiple of pad_to,
    <= max_tile) whose round-up padding waste stays under `max_waste` is used.
    """
    padded_min = _round_up(size, pad_to)
    if padded_min <= max_tile:
        return padded_min, padded_min
    t = (max_tile // pad_to) * pad_to
    while t >= pad_to:
        padded = _round_up(padded_min, t)
        if padded - padded_min <= max_waste * padded_min:
            return padded, t
        t -= pad_to
    return padded_min, pad_to  # pad_to always has zero waste


# ----------------------------------------------------------------------------
# Pallas kernel: K-tiled  acc += x_blk @ w_blk ; acc initialized with bias;
# epilogue applies the activation (and the cast for non-f32 outputs).
# ----------------------------------------------------------------------------
def _dense_kernel(x_ref, w_ref, b_ref, o_ref, *scratch, activation):
    # f32 accumulator: VMEM scratch for non-f32 outputs, otherwise the output
    # tile itself (its block index is constant across k, so it is resident in
    # VMEM for the whole reduction -> no extra scratch, no epilogue copy).
    acc_ref = scratch[0] if scratch else o_ref
    k = pl.program_id(2)

    @pl.when(k == 0)
    def _():
        acc_ref[...] = jnp.broadcast_to(b_ref[...], acc_ref.shape)

    acc_ref[...] += jnp.dot(x_ref[...].astype(jnp.bfloat16), w_ref[...],
                            preferred_element_type=jnp.float32)

    if scratch or activation == 'relu':
        @pl.when(k == pl.num_programs(2) - 1)
        def _():
            out = acc_ref[...]
            if activation == 'relu':
                out = jnp.maximum(out, 0.0)
            o_ref[...] = out.astype(o_ref.dtype)


# ----------------------------------------------------------------------------
# Module: init (he_normal weight, PyTorch Linear default bias) + build + forward
# ----------------------------------------------------------------------------
def init_dense(key, in_features, out_features, kernel_initializer='he_normal'):
    if kernel_initializer != 'he_normal':
        raise NotImplementedError
    wkey, bkey = jax.random.split(key)
    # kaiming_normal_ (fan_in, relu gain): std = sqrt(2 / fan_in); weight is (out, in)
    w = (jax.random.normal(wkey, (out_features, in_features), jnp.float32)
         * (2.0 / in_features) ** 0.5)
    bound = 1.0 / in_features ** 0.5
    b = jax.random.uniform(bkey, (out_features,), jnp.float32, -bound, bound)
    return w, b


def make_dense(w, b, activation='relu', *, tk_max=1024, tn_max=512):
    """Pre-pad + pre-cast (once) the PyTorch-layout weight (out, in) and bias."""
    out_features, in_features = w.shape
    Kp, tk = _choose_tile(in_features, tk_max, 128)
    Np, tn = _choose_tile(out_features, tn_max, 128)
    wp = jnp.pad(jnp.asarray(w, jnp.float32).T,
                 ((0, Kp - in_features), (0, Np - out_features))).astype(jnp.bfloat16)
    bp = jnp.pad(jnp.asarray(b, jnp.float32),
                 (0, Np - out_features)).reshape(1, Np)
    return dict(in_features=in_features, out_features=out_features,
                activation=activation, w=wp, b=bp,
                Kp=Kp, Np=Np, tk=tk, tn=tn)


def dense_forward(params, x, *, tm_max=1024, out_dtype=None):
    """Matches Dense.forward: act(x @ W.T + b) for x of shape (..., in_features)."""
    K = params['in_features']
    N = params['out_features']
    Kp, Np, tk, tn = params['Kp'], params['Np'], params['tk'], params['tn']
    out_dtype = jnp.dtype(x.dtype if out_dtype is None else out_dtype)

    lead = x.shape[:-1]
    x2 = x.reshape(-1, K)
    M = x2.shape[0]

    Mp, tm = _choose_tile(max(M, 16), tm_max, 16)

    # Guarantee >= 2 blocks along a "parallel" axis (v7x has 2 TensorCores).
    if (Mp // tm) * (Np // tn) < 2:
        new_tn = next((t for t in range(tn - 128, 127, -128) if Np % t == 0), None)
        if new_tn is not None:
            tn = new_tn
        elif tm >= 32 and (tm // 2) % 16 == 0 and Mp % (tm // 2) == 0:
            tm //= 2

    # Single fused pad(+bf16 cast) pass only when padding is actually needed;
    # otherwise feed x at its native dtype (cast to bf16 inside the kernel).
    if (Mp, Kp) != (M, K):
        xp = jnp.pad(x2, ((0, Mp - M), (0, Kp - K))).astype(jnp.bfloat16)
    else:
        xp = x2

    grid = (Mp // tm, Np // tn, Kp // tk)
    use_scratch = out_dtype != jnp.dtype(jnp.float32)
    scratch_shapes = [pltpu.VMEM((tm, tn), jnp.float32)] if use_scratch else []

    kernel = functools.partial(_dense_kernel, activation=params['activation'])

    vmem_bytes = (2 * tm * tk * xp.dtype.itemsize          # x double buffer
                  + 2 * tk * tn * 2                        # bf16 W double buffer
                  + 2 * tm * tn * out_dtype.itemsize       # out double buffer
                  + (tm * tn * 4 if use_scratch else 0)    # f32 accumulator
                  + 2 * tn * 4                             # bias
                  + (2 << 20))                             # headroom
    vmem_limit = min(max(vmem_bytes, 16 << 20), 48 << 20)  # <=48 MiB: safe on v7x

    out = pl.pallas_call(
        kernel,
        out_shape=jax.ShapeDtypeStruct((Mp, Np), out_dtype),
        grid_spec=pltpu.PrefetchScalarGridSpec(
            num_scalar_prefetch=0,
            grid=grid,
            in_specs=[
                pl.BlockSpec((tm, tk), lambda i, j, k: (i, k)),
                pl.BlockSpec((tk, tn), lambda i, j, k: (k, j)),
                pl.BlockSpec((1, tn), lambda i, j, k: (0, j)),
            ],
            out_specs=pl.BlockSpec((tm, tn), lambda i, j, k: (i, j)),
            scratch_shapes=scratch_shapes,
        ),
        compiler_params=pltpu.CompilerParams(
            dimension_semantics=("parallel", "parallel", "arbitrary"),
            vmem_limit_bytes=vmem_limit,
        ),
    )(xp, params['w'], params['b'])

    y = out[:M, :N] if (Mp, Np) != (M, N) else out
    return y.reshape(*lead, N)


if __name__ == "__main__":
    key = jax.random.PRNGKey(0)
    pkey, xkey = jax.random.split(key)

    IN_FEATURES = 384
    OUT_FEATURES = 256
    w, b = init_dense(pkey, IN_FEATURES, OUT_FEATURES)
    params = make_dense(w, b, activation='relu')

    # Small input consistent with the module: (..., in_features)
    x = jax.random.normal(xkey, (2, 8, IN_FEATURES), jnp.float32)

    # f32 path (in-place output accumulator, no scratch)
    y = jax.block_until_ready(dense_forward(params, x))
    assert y.shape == (2, 8, OUT_FEATURES), y.shape
    assert y.dtype == x.dtype, y.dtype
    assert bool(jnp.all(jnp.isfinite(y)))
    assert bool(jnp.all(y >= 0.0))  # ReLU output

    # Reference (f32, PyTorch Linear semantics): act(x @ W.T + b).
    ref = jnp.maximum(jnp.einsum('bsk,nk->bsn', x, w) + b, 0.0)
    max_err = float(jnp.max(jnp.abs(y - ref)))
    assert max_err < 0.1, f"max abs error {max_err} too large"

    # bf16 path (dtype-preserving output, f32 scratch accumulator)
    yb = jax.block_until_ready(dense_forward(params, x.astype(jnp.bfloat16)))
    assert yb.dtype == jnp.bfloat16, yb.dtype
    max_err_b = float(jnp.max(jnp.abs(yb.astype(jnp.float32) - ref)))
    assert max_err_b < 0.25, f"bf16 max abs error {max_err_b} too large"

    print("KERNEL_OK")
</pallas_src>

<mosaic_0001>
module attributes {stable_mosaic.version = 11 : i64} {
  func.func @_dense_kernel(%arg0: i32, %arg1: i32, %arg2: i32, %arg3: memref<16x384xf32, #tpu.memory_space<vmem>>, %arg4: memref<384x128xbf16, #tpu.memory_space<vmem>>, %arg5: memref<1x128xf32, #tpu.memory_space<vmem>>, %arg6: memref<16x128xf32, #tpu.memory_space<vmem>>) attributes {dimension_semantics = [#tpu.dimension_semantics<parallel>, #tpu.dimension_semantics<parallel>, #tpu.dimension_semantics<arbitrary>], iteration_bounds = array<i64: 1, 2, 1>, scalar_prefetch = 0 : i64, scratch_operands = 0 : i64, tpu.core_type = #tpu.core_type<tc>, window_params = [{transform_indices = @transform_0, window_bounds = array<i64: 16, 384>}, {transform_indices = @transform_1, window_bounds = array<i64: 384, 128>}, {transform_indices = @transform_2, window_bounds = array<i64: 1, 128>}, {transform_indices = @transform_3, window_bounds = array<i64: 16, 128>}]} {
    %c0_i32 = arith.constant 0 : i32
    %0 = arith.cmpi eq, %arg2, %c0_i32 : i32
    %1 = arith.extui %0 : i1 to i32
    %c0_i32_0 = arith.constant 0 : i32
    %2 = arith.cmpi ne, %1, %c0_i32_0 : i32
    scf.if %2 {
      %c0_10 = arith.constant 0 : index
      %c0_11 = arith.constant 0 : index
      %13 = vector.load %arg5[%c0_10, %c0_11] : memref<1x128xf32, #tpu.memory_space<vmem>>, vector<1x128xf32>
      %14 = vector.shape_cast %13 : vector<1x128xf32> to vector<1x128xf32>
      %15 = vector.broadcast %14 : vector<1x128xf32> to vector<16x128xf32>
      %c0_12 = arith.constant 0 : index
      %c0_13 = arith.constant 0 : index
      %16 = vector.load %arg6[%c0_12, %c0_13] : memref<16x128xf32, #tpu.memory_space<vmem>>, vector<16x128xf32>
      tpu.vector_store %arg6[%c0_12, %c0_13], %15 {strides = array<i32>} : memref<16x128xf32, #tpu.memory_space<vmem>>, vector<16x128xf32>,
    } else {
    }
    %c0 = arith.constant 0 : index
    %c0_1 = arith.constant 0 : index
    %3 = vector.load %arg6[%c0, %c0_1] : memref<16x128xf32, #tpu.memory_space<vmem>>, vector<16x128xf32>
    %c0_2 = arith.constant 0 : index
    %c0_3 = arith.constant 0 : index
    %4 = vector.load %arg3[%c0_2, %c0_3] : memref<16x384xf32, #tpu.memory_space<vmem>>, vector<16x384xf32>
    %5 = arith.truncf %4 : vector<16x384xf32> to vector<16x384xbf16>
    %c0_4 = arith.constant 0 : index
    %c0_5 = arith.constant 0 : index
    %6 = vector.load %arg4[%c0_4, %c0_5] : memref<384x128xbf16, #tpu.memory_space<vmem>>, vector<384x128xbf16>
    %cst = arith.constant dense<0.000000e+00> : vector<16x128xf32>
    %7 = tpu.matmul %5, %6, %cst {dimension_numbers = #tpu.dot_dimension_numbers<[1], [0], [0], [1], [0, 0, 1, 1], [], []>} : vector<16x384xbf16>, vector<384x128xbf16>, vector<16x128xf32> -> vector<16x128xf32>
    %8 = arith.addf %3, %7 : vector<16x128xf32>
    %c0_6 = arith.constant 0 : index
    %c0_7 = arith.constant 0 : index
    %9 = vector.load %arg6[%c0_6, %c0_7] : memref<16x128xf32, #tpu.memory_space<vmem>>, vector<16x128xf32>
    tpu.vector_store %arg6[%c0_6, %c0_7], %8 {strides = array<i32>} : memref<16x128xf32, #tpu.memory_space<vmem>>, vector<16x128xf32>,
    %c0_i32_8 = arith.constant 0 : i32
    %10 = arith.cmpi eq, %arg2, %c0_i32_8 : i32
    %11 = arith.extui %10 : i1 to i32
    %c0_i32_9 = arith.constant 0 : i32
    %12 = arith.cmpi ne, %11, %c0_i32_9 : i32
    scf.if %12 {
      %c0_10 = arith.constant 0 : index
      %c0_11 = arith.constant 0 : index
      %13 = vector.load %arg6[%c0_10, %c0_11] : memref<16x128xf32, #tpu.memory_space<vmem>>, vector<16x128xf32>
      %cst_12 = arith.constant 0.000000e+00 : f32
      %14 = vector.broadcast %cst_12 : f32 to vector<16x128xf32>
      %15 = arith.maximumf %13, %14 : vector<16x128xf32>
      %c0_13 = arith.constant 0 : index
      %c0_14 = arith.constant 0 : index
      %16 = vector.load %arg6[%c0_13, %c0_14] : memref<16x128xf32, #tpu.memory_space<vmem>>, vector<16x128xf32>
      tpu.vector_store %arg6[%c0_13, %c0_14], %15 {strides = array<i32>} : memref<16x128xf32, #tpu.memory_space<vmem>>, vector<16x128xf32>,
    } else {
    }
    return
  }
  func.func @transform_0(%arg0: i32, %arg1: i32, %arg2: i32) -> (i32, i32) {
    %c0_i32 = arith.constant 0 : i32
    return %arg0, %arg2 : i32, i32
  }
  func.func @transform_1(%arg0: i32, %arg1: i32, %arg2: i32) -> (i32, i32) {
    %c0_i32 = arith.constant 0 : i32
    return %arg2, %arg1 : i32, i32
  }
  func.func @transform_2(%arg0: i32, %arg1: i32, %arg2: i32) -> (i32, i32) {
    %c0_i32 = arith.constant 0 : i32
    %c0_i32_0 = arith.constant 0 : i32
    return %c0_i32, %arg1 : i32, i32
  }
  func.func @transform_3(%arg0: i32, %arg1: i32, %arg2: i32) -> (i32, i32) {
    %c0_i32 = arith.constant 0 : i32
    return %arg0, %arg1 : i32, i32
  }
}

</mosaic_0001>

<bundles_post_ra>
// kernel: tpu_custom_call.1
= control target key start
LH: loop header
LB: loop body
LE: loop exit
PB: predicated region body
PF: predicated region fallthrough
CT: control target
= control target key end

     0   :  { %8 = vsyncpa [#allocation3], 0  ;;  %s1340_s0 = inlined_call_operand.hbm [shape: f32[16,384], index: 0, kind: input, shape index: {}]   ;;  %s1341_s1 = inlined_call_operand.hbm [shape: bf16[384,256], index: 1, kind: input, shape index: {}]   ;;  %s1342_s2 = inlined_call_operand.vmem [shape: f32[1,256], index: 2, kind: input, shape index: {}]   ;;  %s1343_s3 = inlined_call_operand.hbm [shape: f32[16,256], index: 3, kind: output, shape index: {}]  }
   0x1   :  { %9 = vsyncpa [#allocation6], 0 }
   0x2   :  { %11 = vsyncpa [#allocation6 + $0x1], 0 }
   0x3   :  { %12 = vsyncpa [#allocation4], 0 }
   0x4   :  { %14 = vsyncpa [#allocation4 + $0x1], 0  ;;  %s1079_s12 = smov 0   ;;  %s1081_s13 = smov 0  }
   0x5   :  { %s1083_s14 = smov 0   ;;  %s1085_s15 = smov 0  }
   0x6   :  { %s1087_s16 = smov 0   ;;  %s1089_s17 = smov 0  }
   0x7 LB: > { %s702_s18 = sadd.s32 4294967295, %s1044_s17   ;;  %s703_s19 = sadd.s32 4294967294, %s1044_s17   ;;  %s1044_s17 = sphi %s1089_s17, %s20_s17   ;;  %s1040_s16 = sphi %s1087_s16, %s1369_s16   ;;  %s1036_s15 = sphi %s1085_s15, %s1368_s15   ;;  %s1032_s14 = sphi %s1083_s14, %s1367_s14   ;;  %s1028_s13 = sphi %s1081_s13, %s1366_s13   ;;  %s1024_s12 = sphi %s1079_s12, %s1365_s12  }
   0x8   : > { %p83_p0 = scmp.ne.s32.totalorder %s1032_s14, %s1028_s13  ;;  %p84_p1 = scmp.eq.s32.totalorder %s1044_s17, 0 }
   0x9   : > { %p89_p2 = scmp.ne.s32.totalorder %s1028_s13, %s1024_s12  ;;  %p1116_p3 = scmp.eq.s32.totalorder %s702_s18, 0 }
   0xa   : > { %p1120_p4 = por %p84_p1, %p83_p0  ;;  %p141_p5 = scmp.eq.s32.totalorder %s702_s18, 1 }
   0xb   : > { %s1350_s20 = scalar_select %p1116_p3, 1, 0 }
   0xc   : > { %p1126_p6 = por %p1116_p3, %p89_p2  ;;  %p147_p7 = scmp.eq.s32.totalorder %s703_s19, 1 }
   0xd   : > { %p1130_p8 = por %p141_p5, %p83_p0  ;;  %p704_p9 = scmp.ge.s32.totalorder %s1044_s17, 1 }
   0xe   : > { %s1352_s22 = scalar_select %p1126_p6, 1, 0 }
   0xf   : > { %s1353_s23 = scalar_select %p1130_p8, 1, 0 }
  0x10   : > { %p1135_p10 = por %p147_p7, %p89_p2  ;;  %p154_p11 = scmp.lt.s32.totalorder %s1044_s17, 3 }
  0x11   : > { %s1046_s26 = smov [#allocation2]   ;;  %p814_p1 = scmp.lt.s32.totalorder %s1044_s17, 2 }
  0x12   : > { %s1354_s24 = scalar_select %p1135_p10, 1, 0 }
  0x13   : > { %p1140_p12 = pnand %p704_p9, %p154_p11  ;;  %s172_s27 = sshll.u32 %s1046_s26, 4  ;;  %s1144_s27 = int_to_ptr.vmem [resolvable:$true] %s172_s27 }
  0x14   : > { %p1158_p2 = pnand %p814_p1, %p1120_p4  ;;  %s35_s30 = sadd.s32 1, %s1040_s16 }
  0x15   : > { %s1355_s25 = scalar_select %p1140_p12, 1, 0 }
  0x16   : > { %p801_p13 = pneg %p1140_p12  ;;  %s900_s6 = scalar_lea.hbm %s1340_s0, 768 }
  0x17   : > { %s1357_s29 = scalar_select %p1158_p2, 1, 0 }
  0x18   : > { %p1152_p5 = pnand %p801_p13, %p1116_p3  ;;  %p901_p7 = scmp.ne.s32.totalorder %s1340_s0, %s900_s6 }
  0x19   : > { %p907_p4 = scmp.lt.u32.totalorder %s900_s6, %s1340_s0 }
  0x1a   : > { %p902_p9 = pneg %p1152_p5 }
  0x1c   : > { %p903_p11 = pnand %p902_p9, %p901_p7 }
  0x1e   : > { %p904_p13 = pneg %p903_p11 }
  0x20   : > { %p909_p1 = pnand %p907_p4, %p904_p13 }
  0x22   : > { %912 = shalt.err (!%p909_p1)
}
  0x23   : > { %s913_s11 = scalar_lea.vmem %s1144_s27, 768  ;;  %p921_p6 = scmp.lt.s32.totalorder %s1144_s27, %s1144_s27 }
  0x24   : > { %p914_p0 = scmp.ne.s32.totalorder %s1144_s27, %s913_s11  ;;  %p922_p3 = scmp.lt.s32.totalorder %s913_s11, %s913_s11 }
  0x26   : > { %p916_p10 = pnand %p914_p0, %p902_p9  ;;  %p923_p12 = por %p922_p3, %p921_p6 }
  0x28   : > { %p917_p8 = pneg %p916_p10 }
  0x2a   : > { %p924_p2 = pnand %p923_p12, %p917_p8 }
  0x2c   : > { %927 = shalt.err (!%p924_p2)
}
  0x2d   : > { %s1047_s18 = smov 384   ;;  %s1048_s19 = smov 24  }
  0x2e   : > { %804 = dma.hbm_to_vmem [thread:$0]  (!%p1152_p5), %s1340_s0, 768, %s1144_s27, [#allocation3], %s1047_s18, %s1047_s18, %s1048_s19  }
  0x2f   : > { %p37_p10 = scmp.ge.s32.totalorder %s35_s30, 2  ;;  %s76_s4 = sadd.s32 1, %s1032_s14 }
  0x30   : > { %s186_s5 = sand.u32 1, %s1032_s14   ;;  %s707_s8 = sshll.u32 %s1040_s16, 6 }
  0x31   : > { %s1371_s30 = smov (%p37_p10, %s35_s30), 0  ;;  %s791_s6 = smul.u32 192, %s186_s5 }
  0x32   : > { %s72_s7 = ssub.s32 %s1040_s16, %s1371_s30  ;;  %s1194_s28 = scalar_lea.hbm %s1341_s1, %s707_s8 }
  0x33   : > { %p74_p3 = scmp.eq.s32.totalorder %s72_s7, 0  ;;  %s190_s27 = scalar_lea.vmem [#allocation5], %s791_s6 }
  0x34   : > { %s199_s11 = sshll.u32 %s190_s27, 4  ;;  %s1201_s19 = scalar_lea.sflag [#allocation6], %s186_s5  ;;  %s1199_s11 = int_to_ptr.vmem [resolvable:$true] %s199_s11 }
  0x35   : > { %s1197_s18 = scalar_select %p74_p3, %s1032_s14, %s76_s4  }
  0x36   : > { %s928_s21 = scalar_lea.hbm %s1194_s28, 3072  ;;  %p1358_p8 = scmp.ne.s32.totalorder %s1357_s29, 0 }
  0x37   : > { %p929_p6 = scmp.ne.s32.totalorder %s1194_s28, %s928_s21  ;;  %s933_s8 = scalar_lea.hbm %s1341_s1, 6144 }
  0x38   : > { %p930_p12 = pneg %p1358_p8  ;;  %p934_p2 = scmp.lt.u32.totalorder %s1194_s28, %s1341_s1 }
  0x39   : > { %p935_p7 = scmp.lt.u32.totalorder %s933_s8, %s928_s21  ;;  %p937_p11 = scmp.lt.u32.totalorder %s928_s21, %s1194_s28 }
  0x3a   : > { %p931_p0 = pnand %p930_p12, %p929_p6 }
  0x3b   : > { %p936_p9 = por %p935_p7, %p934_p2 }
  0x3c   : > { %p932_p5 = pneg %p931_p0 }
  0x3d   : > { %p938_p13 = por %p937_p11, %p936_p9 }
  0x3f   : > { %p939_p4 = pnand %p938_p13, %p932_p5 }
  0x41   : > { %942 = shalt.err (!%p939_p4)
}
  0x42   : > { %s943_s4 = scalar_lea.vmem %s1199_s11, 3072  ;;  %s1049_s5 = smov [#allocation5]  }
  0x43   : > { %p944_p1 = scmp.ne.s32.totalorder %s1199_s11, %s943_s4  ;;  %s948_s10 = sshll.u32 %s1049_s5, 4  ;;  %s949_s10 = int_to_ptr.vmem [resolvable:$false] %s948_s10 }
  0x44   : > { %s950_s27 = scalar_lea.vmem %s949_s10, 6144  ;;  %p951_p6 = scmp.lt.s32.totalorder %s1199_s11, %s949_s10 }
  0x45   : > { %p946_p10 = pnand %p944_p1, %p930_p12  ;;  %p952_p0 = scmp.lt.s32.totalorder %s950_s27, %s943_s4 }
  0x47   : > { %p947_p3 = pneg %p946_p10  ;;  %p953_p2 = por %p952_p0, %p951_p6 }
  0x49   : > { %p954_p7 = pnand %p953_p2, %p947_p3 }
  0x4b   : > { %957 = shalt.err (!%p954_p7)
}
  0x4c   : > { %s1050_s21 = smov 128   ;;  %s1051_s26 = smov 64  }
  0x4d   : > { %s1052_s7 = smov 4   ;;  %p1359_p12 = scmp.ne.s32.totalorder %s1355_s25, 0 }
  0x4e   : > { %808 = dma.hbm_to_vmem [thread:$0]  (!%p1358_p8), %s1194_s28, 3072, %s1199_s11, %s1201_s19, %s1050_s21, %s1051_s26, %s1052_s7  }
  0x4f   : > { %217 = sbr.rel (%p1359_p12) target bundleno = 365 (0x16d), region = 32  ;;  %p1360_p5 = scmp.ne.s32.totalorder (!%p1359_p12), %s1350_s20, 0 }
  0x56   : > { %1011 = dma.done.wait (%p1360_p5), [#allocation3], 768  }
  0x57   : > { %1013 = vsyncadd (%p1360_p5), [#allocation3], 4294966528  ;;  %s1236_s8 = sand.u32 1, %s1028_s13   ;;  %p1361_p8 = scmp.ne.s32.totalorder %s1352_s22, 0 }
  0x58   : > { %s792_s6 = smul.u32 192, %s1236_s8  ;;  %s224_s9 = scalar_lea.sflag [#allocation6], %s1236_s8 }
  0x5a   : > { %s1240_s4 = scalar_lea.vmem [#allocation5], %s792_s6 }
  0x5b   : > { %1015 = dma.done.wait (%p1361_p8), %s224_s9, 3072  }
  0x5c   : > { %1017 = vsyncadd (%p1361_p8), %s224_s9, 4294964224  ;;  %v1053_v0 = vmov 0.0   ;;  %vm1054_vm0 = vmmov 0   ;;  %v876_v1 = vld [vmem:[%s1240_s4 + $0x40] sm:$0xff]   ;;  %v879_v4 = vld [vmem:[%s1240_s4 + $0x48] sm:$0xff]   ;;  %p256_p9 = scmp.lt.s32.totalorder %s1036_s15, 1 }
  0x5d   : > { %771 = vmatprep.subr.bf16.mxu1 %v1053_v0  ;;  %787 = vmatprep.mubr.msk.bf16.mxu1 %vm1054_vm0, %v1053_v0  ;;  %v877_v2 = vld [vmem:[%s1240_s4] sm:$0xff]   ;;  %v880_v5 = vld [vmem:[%s1240_s4 + $0x8] sm:$0xff]   ;;  %v882_v7 = vld [vmem:[%s1240_s4 + $0x50] sm:$0xff]   ;;  %s710_s22 = sshll.u32 %s1236_s8, 4  ;;  %s737_s11 = sshll.u32 %s1036_s15, 7 }
  0x5e   : > { %740 = vmatprep.subr.bf16.mxu0 %v876_v1  ;;  %v878_v3 = vld [vmem:[%s1240_s4 + $0x80] sm:$0xff]   ;;  %v881_v6 = vld [vmem:[%s1240_s4 + $0x88] sm:$0xff]   ;;  %v883_v8 = vld [vmem:[%s1240_s4 + $0x10] sm:$0xff]   ;;  %s257_s20 = scalar_select %p256_p9, %s1036_s15, 1 }
  0x5f   : > { %741 = vmatpush3.bf16.msra.mxu0 %v877_v2  ;;  %772 = vmatpush3.bf16.msra.mxu1 %v878_v3  ;;  %v884_v9 = vld [vmem:[%s1240_s4 + $0x90] sm:$0xff]   ;;  %v885_v10 = vld [vmem:[%s1240_s4 + $0x58] sm:$0xff]   ;;  %v888_v13 = vld [vmem:[%s1240_s4 + $0x60] sm:$0xff]   ;;  %s252_s19 = scalar_lea.vmem [#allocation7], %s710_s22  ;;  %s1289_s21 = scalar_lea.hbm %s1343_s3, %s737_s11 }
  0x60   : > { %742 = vmatprep.subr.bf16.mxu0 %v879_v4  ;;  %773 = vmatprep.subr.bf16.mxu1 %v1053_v0  ;;  %v886_v11 = vld [vmem:[%s1240_s4 + $0x18] sm:$0xff]   ;;  %v889_v14 = vld [vmem:[%s1240_s4 + $0x20] sm:$0xff]   ;;  %v891_v16 = vld [vmem:[%s1240_s4 + $0x68] sm:$0xff]   ;;  %s258_s28 = scalar_lea.vmem %s1342_s2, %s257_s20  ;;  %s588_s5 = sshll.u32 %s252_s19, 4  ;;  %s1291_s5 = int_to_ptr.vmem [resolvable:$true] %s588_s5 }
  0x61   : > { %v887_v12 = vld [vmem:[%s1240_s4 + $0x98] sm:$0xff]   ;;  %v890_v15 = vld [vmem:[%s1240_s4 + $0xa0] sm:$0xff]   ;;  %v892_v17 = vld [vmem:[%s1240_s4 + $0x28] sm:$0xff]   ;;  %s573_s15 = scalar_lea.sflag [#allocation4], %s1236_s8  ;;  %s958_s26 = scalar_lea.vmem %s1291_s5, 256 }
  0x62   : > { %v893_v18 = vld [vmem:[%s1240_s4 + $0xa8] sm:$0xff]   ;;  %v894_v19 = vld [vmem:[%s1240_s4 + $0x70] sm:$0xff]   ;;  %v897_v22 = vld [vmem:[%s1240_s4 + $0x78] sm:$0xff]   ;;  %p959_p11 = scmp.ne.s32.totalorder %s1291_s5, %s958_s26  ;;  %p1362_p13 = scmp.ne.s32.totalorder %s1353_s23, 0 }
  0x63   : > { %743 = vmatpush3.bf16.msra.mxu0 %v880_v5  ;;  %774 = vmatpush3.bf16.msra.mxu1 %v881_v6  ;;  %v895_v20 = vld [vmem:[%s1240_s4 + $0x30] sm:$0xff]   ;;  %v277_v23 = vld [vmem:[#allocation2 + $0x8] sm:$0xff]  ;;  %v279_v28 = vld [vmem:[#allocation2 + $0x18] sm:$0xff]  ;;  %s1055_s7 = smov [#allocation7]  }
  0x64   : > { %744 = vmatprep.subr.bf16.mxu0 %v882_v7  ;;  %775 = vmatprep.subr.bf16.mxu1 %v1053_v0  ;;  %v896_v21 = vld [vmem:[%s1240_s4 + $0xb0] sm:$0xff]   ;;  %v898_v26 = vld [vmem:[%s1240_s4 + $0x38] sm:$0xff]   ;;  %v278_v30 = vld [vmem:[#allocation2 + $0x10] sm:$0xff]  ;;  %p960_p4 = pnand %p959_p11, %p1362_p13  ;;  %s962_s6 = sshll.u32 %s1055_s7, 4  ;;  %s963_s6 = int_to_ptr.vmem [resolvable:$false] %s962_s6 }
  0x65   : > { %v280_v24 = vld [vmem:[#allocation2 + $0x20] sm:$0xff]  ;;  %v899_v29 = vld [vmem:[%s1240_s4 + $0xb8] sm:$0xff]   ;;  %s964_s9 = scalar_lea.vmem %s963_s6, 512  ;;  %p965_p10 = scmp.lt.s32.totalorder %s1291_s5, %s963_s6 }
  0x66   : > { %v283_v25 = vpack.c.bf16 %v280_v24, %v277_v23  ;;  %v276_v27 = vld [vmem:[#allocation2] sm:$0xff]  ;;  %v281_v31 = vld [vmem:[#allocation2 + $0x28] sm:$0xff]  ;;  %p961_p1 = pneg %p960_p4  ;;  %p966_p3 = scmp.lt.s32.totalorder %s964_s9, %s958_s26 }
  0x67   : > { %745 = vmatpush3.bf16.msra.mxu0 %v883_v8  ;;  %776 = vmatpush3.bf16.msra.mxu1 %v884_v9  ;;  %v282_v32 = vpack.c.bf16 %v279_v28, %v276_v27  ;;  %v284_v33 = vpack.c.bf16 %v281_v31, %v278_v30  ;;  %v711_v40 = vld [vmem:[%s258_s28] ss:$0 sm:$0xff] }
  0x68   : > { %746 = vmatprep.subr.bf16.mxu0 %v885_v10  ;;  %777 = vmatprep.subr.bf16.mxu1 %v1053_v0  ;;  %p967_p6 = por %p966_p3, %p965_p10 }
  0x69   : > { %509 = vmatprep.mubr.bf16.mxu0 %v283_v25 }
  0x6a   : > { %p968_p0 = pnand %p967_p6, %p961_p1 }
  0x6b   : > { %747 = vmatpush3.bf16.msra.mxu0 %v886_v11  ;;  %778 = vmatpush3.bf16.msra.mxu1 %v887_v12 }
  0x6c   : > { %748 = vmatprep.subr.bf16.mxu0 %v888_v13  ;;  %779 = vmatprep.subr.bf16.mxu1 %v1053_v0 }
  0x6f   : > { %749 = vmatpush3.bf16.msra.mxu0 %v889_v14  ;;  %780 = vmatpush3.bf16.msra.mxu1 %v890_v15 }
  0x70   : > { %750 = vmatprep.subr.bf16.mxu0 %v891_v16  ;;  %781 = vmatprep.subr.bf16.mxu1 %v1053_v0 }
  0x73   : > { %751 = vmatpush3.bf16.msra.mxu0 %v892_v17  ;;  %782 = vmatpush3.bf16.msra.mxu1 %v893_v18 }
  0x74   : > { %752 = vmatprep.subr.bf16.mxu0 %v894_v19  ;;  %783 = vmatprep.subr.bf16.mxu1 %v1053_v0 }
  0x77   : > { %753 = vmatpush3.bf16.msra.mxu0 %v895_v20  ;;  %784 = vmatpush3.bf16.msra.mxu1 %v896_v21 }
  0x78   : > { %754 = vmatprep.subr.bf16.mxu0 %v897_v22  ;;  %785 = vmatprep.subr.bf16.mxu1 %v1053_v0 }
  0x7b   : > { %755 = vmatpush3.bf16.msra.mxu0 %v898_v26  ;;  %786 = vmatpush3.bf16.msra.mxu1 %v899_v29 }
  0x7e   : > { %510 = vmatmul.mubr.bf16.vlgmr.msra.gmra.mrb[0].mxu0 %v282_v32  ;;  %788 = vmatmul.mubr.bf16.vlgmr.msra.gmra.mrb[0].mxu1 %v284_v33 }
 0x151   : > { %v756_v34 = vpop.f32.mrb[0].mxu0  ;;  %v552_v35 = vpop.f32.mrb[0].mxu1 }
 0x152   : > { %v757_v36 = vpop.f32.mrb[1].mxu0  ;;  %v789_v38 = vpop.f32.mrb[1].mxu1 }
 0x153   : > { %v758_v37 = vadd.f32 %v757_v36, %v756_v34  ;;  %v759_v39 = vpop.f32.mrb[2].mxu0  ;;  %v555_v41 = vpop.f32.mrb[2].mxu1 }
 0x154   : > { %v760_v42 = vpop.f32.mrb[3].mxu0  ;;  %v790_v45 = vpop.f32.mrb[3].mxu1 }
 0x155   : > { %v553_v43 = vadd.f32 %v758_v37, %v552_v35  ;;  %v761_v44 = vadd.f32 %v760_v42, %v759_v39 }
 0x157   : > { %v559_v46 = vadd.f32 %v711_v40, %v553_v43  ;;  %v556_v47 = vadd.f32 %v761_v44, %v555_v41 }
 0x159   : > { %v568_v48 = vmax.f32 %v559_v46, 0.0  ;;  %v560_v49 = vadd.f32 %v711_v40, %v556_v47 }
 0x15b   : > { %570 = vst [vmem:[%s252_s19] sm:$0xff] %v568_v48  ;;  %v569_v50 = vmax.f32 %v560_v49, 0.0 }
 0x15d   : > { %571 = vst [vmem:[%s252_s19 + $0x8] sm:$0xff] %v569_v50 }
 0x15e   : > { %971 = shalt.err (!%p968_p0)
}
 0x15f   : > { %s972_s4 = scalar_lea.hbm %s1289_s21, 256  ;;  %s976_s25 = scalar_lea.hbm %s1343_s3, 512 }
 0x160   : > { %p973_p2 = scmp.ne.s32.totalorder %s1289_s21, %s972_s4  ;;  %p977_p5 = scmp.lt.u32.totalorder %s1289_s21, %s1343_s3 }
 0x161   : > { %p978_p8 = scmp.lt.u32.totalorder %s976_s25, %s972_s4  ;;  %p980_p11 = scmp.lt.u32.totalorder %s972_s4, %s1289_s21 }
 0x162   : > { %p974_p7 = pnand %p973_p2, %p1362_p13 }
 0x163   : > { %p979_p9 = por %p978_p8, %p977_p5 }
 0x164   : > { %p975_p12 = pneg %p974_p7 }
 0x165   : > { %p981_p4 = por %p980_p11, %p979_p9 }
 0x167   : > { %p982_p1 = pnand %p981_p4, %p975_p12 }
 0x169   : > { %985 = shalt.err (!%p982_p1)
}
 0x16a   : > { %s1056_s11 = smov 128   ;;  %s1057_s19 = smov 256  }
 0x16b   : > { %s1058_s10 = smov 8  }
 0x16c   : > { %799 = dma.vmem_to_hbm [thread:$0]  (%p1362_p13), %s1291_s5, 256, %s1289_s21, %s573_s15, %s1056_s11, %s1057_s19, %s1058_s10  }
 0x16d PF: > { %s603_s27 = sand.u32 1, %s1024_s12   ;;  %p1363_p10 = scmp.ne.s32.totalorder %s1354_s24, 0 }
 0x16e   : > { %p1364_p3 = scmp.ge.s32.totalorder %s1044_s17, 2  ;;  %s604_s26 = scalar_lea.sflag [#allocation4], %s603_s27 }
 0x170   : > { %p810_p6 = pnand %p1364_p3, %p1363_p10 }
 0x172   : > { %1019 = dma.done.wait (!%p810_p6), %s604_s26, 256  }
 0x173   : > { %1021 = vsyncadd (!%p810_p6), %s604_s26, 4294967040  ;;  %s20_s17 = sadd.s32 1, %s1044_s17   ;;  %s1365_s12 = smov %s1028_s13 }
 0x174   : > { %p17_p0 = scmp.ge.s32.totalorder %s20_s17, 4   ;;  %s1366_s13 = smov %s1032_s14 }
 0x175   : > { %s1367_s14 = smov %s1197_s18  ;;  %s1368_s15 = smov %s1040_s16 }
 0x176   : > { %s1369_s16 = smov %s1371_s30  ;;  %19 = sbr.rel (!%p17_p0) target bundleno = 7 (0x7), region = 94 }
 0x17d   :  { %609 = vsyncpa [#allocation3], 1 }
 0x17e   :  { %611 = vsyncpa [#allocation3 + $0x1], 1 }
 0x17f   :  { %612 = vsyncpa [#allocation6], 1 }
 0x180   :  { %614 = vsyncpa [#allocation6 + $0x1], 1 }
 0x181   :  { %615 = vsyncpa [#allocation4], 1 }
 0x182   :  { %617 = vsyncpa [#allocation4 + $0x1], 1 }

</bundles_post_ra>
